<compile_context>
chip_gen: v5e
topology: v5e:2x2
jax: 0.10.0
libtpu: 0.0.40
codegen_flags: <defaults>
</compile_context>

<pallas_src>
import jax
import jax.numpy as jnp
from jax.experimental import pallas as pl
from jax.experimental.pallas import tpu as pltpu

# ----------------------------- model sizes ---------------------------------
B = 2            # batch
H = W = 16       # spatial
HW = H * W
CIN = 3          # channels after the (folded) repeat(1,3,1,1)
COUT = 32        # backbone conv channels
D = 64           # adapter hidden
NUM_CLASSES = 10
HEAD_PAD = 128   # lane-dense head output width


# ----------------------------- Pallas kernel --------------------------------
def fused_model_kernel(p_ref, wc_ref, bc_ref, w1_ref, b1_ref, w2_ref, b2_ref,
                       o_ref):
    """Fused backbone + adapter + head.

    p_ref : [B*H*W, 9]     bf16  single-channel im2col patches (channel-folded)
    wc_ref: [9, COUT]      bf16  conv weight summed over the 3 identical channels
    bc_ref: [1, COUT]      f32   conv bias
    w1_ref: [COUT, D]      bf16  adapter weight
    b1_ref: [1, D]         f32   adapter bias
    w2_ref: [D, 128]       bf16  head weight (cols >= NUM_CLASSES are zero)
    b2_ref: [1, 128]       f32   head bias   (cols >= NUM_CLASSES are zero)
    o_ref : [B, 128]       f32   lane-dense logits slab
    """
    # ---- backbone: conv as im2col matmul (bf16 operands, f32 accumulate) ----
    y = jnp.dot(p_ref[...], wc_ref[...], preferred_element_type=jnp.float32)
    y = jnp.maximum(y + bc_ref[...], 0.0)                 # f32 bias + ReLU

    # ---- global average pool: per-batch sublane reduction (XLU path) ----
    inv_hw = jnp.float32(1.0 / HW)
    rows = []
    for bi in range(B):                                   # static, B is tiny
        blk = y[bi * HW:(bi + 1) * HW, :]                 # [HW, COUT] static slice
        rows.append(jnp.sum(blk, axis=0, keepdims=True) * inv_hw)
    feats = jnp.concatenate(rows, axis=0)                 # [B, COUT] f32

    # ---- adapter: Linear + ReLU ----
    h = jnp.dot(feats.astype(jnp.bfloat16), w1_ref[...],
                preferred_element_type=jnp.float32)
    h = jnp.maximum(h + b1_ref[...], 0.0)

    # ---- head: Linear, lane-dense 128-wide store (wrapper slices :NUM_CLASSES) ----
    logits = jnp.dot(h.astype(jnp.bfloat16), w2_ref[...],
                     preferred_element_type=jnp.float32)
    o_ref[...] = logits + b2_ref[...]


_VMEM = pl.BlockSpec(memory_space=pltpu.MemorySpace.VMEM)


# ----------------------------- wrapper ---------------------------------------
def simple_model_forward(x_nchw, params):
    """Forward pass of SimpleModel. x_nchw: [B, 1, H, W] float32."""
    b, _, h, w = x_nchw.shape

    # x.repeat(1,3,1,1) followed by a conv over 3 identical channels is
    # algebraically a conv of the single channel with the channel-summed weight,
    # so no tile / 3x data replication is needed.
    x1 = x_nchw[:, 0, :, :]                               # [B, H, W]
    x_pad = jnp.pad(x1, ((0, 0), (1, 1), (1, 1)))         # zero-pad for 3x3 SAME

    # im2col on the single channel: 9 taps (kh-major, kw-minor) -> [B*H*W, 9]
    taps = [x_pad[:, kh:kh + h, kw:kw + w]
            for kh in range(3) for kw in range(3)]
    patches = jnp.stack(taps, axis=-1).reshape(b * h * w, 9).astype(jnp.bfloat16)

    out = pl.pallas_call(
        fused_model_kernel,
        out_shape=jax.ShapeDtypeStruct((b, HEAD_PAD), jnp.float32),
        in_specs=[_VMEM] * 7,
        out_specs=_VMEM,
    )(patches, params["conv_w_sum_bf16"], params["conv_b"],
      params["adapter_w_bf16"], params["adapter_b"],
      params["head_w_pad_bf16"], params["head_b_pad"])

    return out[:, :NUM_CLASSES]


# ----------------------------- params / reference ---------------------------
def init_params():
    keys = jax.random.split(jax.random.PRNGKey(42), 6)
    conv_w = 0.1 * jax.random.normal(keys[0], (9, CIN, COUT), jnp.float32)
    conv_b = 0.1 * jax.random.normal(keys[1], (1, COUT), jnp.float32)
    adapter_w = 0.1 * jax.random.normal(keys[2], (COUT, D), jnp.float32)
    adapter_b = 0.1 * jax.random.normal(keys[3], (1, D), jnp.float32)
    head_w = 0.1 * jax.random.normal(keys[4], (D, NUM_CLASSES), jnp.float32)
    head_b = 0.1 * jax.random.normal(keys[5], (1, NUM_CLASSES), jnp.float32)

    head_w_pad = jnp.zeros((D, HEAD_PAD), jnp.float32).at[:, :NUM_CLASSES].set(head_w)
    head_b_pad = jnp.zeros((1, HEAD_PAD), jnp.float32).at[:, :NUM_CLASSES].set(head_b)

    return {
        # canonical f32 params (used by the pure-JAX reference)
        "conv_w": conv_w,            # [3*3, CIN, COUT], tap-major
        "conv_b": conv_b,            # [1, COUT]
        "adapter_w": adapter_w,      # [COUT, D]
        "adapter_b": adapter_b,      # [1, D]
        "head_w": head_w,            # [D, NUM_CLASSES]
        "head_b": head_b,            # [1, NUM_CLASSES]
        # kernel-ready tensors: channel-fold, lane padding, bf16 matmul operands
        "conv_w_sum_bf16": conv_w.sum(axis=1).astype(jnp.bfloat16),   # [9, COUT]
        "adapter_w_bf16": adapter_w.astype(jnp.bfloat16),
        "head_w_pad_bf16": head_w_pad.astype(jnp.bfloat16),
        "head_b_pad": head_b_pad,
    }


def reference_forward(x_nchw, params):
    """Pure-JAX f32 reference (real conv, explicit channel repeat)."""
    x3 = jnp.tile(x_nchw, (1, 3, 1, 1))
    xh = jnp.transpose(x3, (0, 2, 3, 1))
    w_hwio = params["conv_w"].reshape(3, 3, CIN, COUT)
    y = jax.lax.conv_general_dilated(
        xh, w_hwio, window_strides=(1, 1), padding="SAME",
        dimension_numbers=("NHWC", "HWIO", "NHWC"),
        precision=jax.lax.Precision.HIGHEST)
    y = jnp.maximum(y + params["conv_b"][0], 0.0)
    f = jnp.mean(y, axis=(1, 2))
    h = jnp.maximum(
        jnp.dot(f, params["adapter_w"], precision=jax.lax.Precision.HIGHEST)
        + params["adapter_b"][0], 0.0)
    return (jnp.dot(h, params["head_w"], precision=jax.lax.Precision.HIGHEST)
            + params["head_b"][0])


# ----------------------------- main ------------------------------------------
if __name__ == "__main__":
    params = init_params()
    x = jax.random.normal(jax.random.PRNGKey(0), (B, 1, H, W), jnp.float32)

    fwd = jax.jit(simple_model_forward)
    out = jax.block_until_ready(fwd(x, params))

    ref = jax.block_until_ready(reference_forward(x, params))
    assert out.shape == (B, NUM_CLASSES), out.shape
    # bf16 matmul operands (f32 accumulation) vs. a pure-f32 reference.
    assert jnp.allclose(out, ref, atol=2e-2, rtol=2e-2), (
        f"max abs err {jnp.max(jnp.abs(out - ref))}")

    print("KERNEL_OK")
</pallas_src>

<mosaic_0001>
module attributes {stable_mosaic.version = 11 : i64} {
  func.func @fused_model_kernel(%arg0: memref<512x9xbf16, #tpu.memory_space<vmem>>, %arg1: memref<9x32xbf16, #tpu.memory_space<vmem>>, %arg2: memref<1x32xf32, #tpu.memory_space<vmem>>, %arg3: memref<32x64xbf16, #tpu.memory_space<vmem>>, %arg4: memref<1x64xf32, #tpu.memory_space<vmem>>, %arg5: memref<64x128xbf16, #tpu.memory_space<vmem>>, %arg6: memref<1x128xf32, #tpu.memory_space<vmem>>, %arg7: memref<2x128xf32, #tpu.memory_space<vmem>>) attributes {dimension_semantics = [], scalar_prefetch = 0 : i64, scratch_operands = 0 : i64, tpu.core_type = #tpu.core_type<tc>} {
    %c0 = arith.constant 0 : index
    %c0_0 = arith.constant 0 : index
    %0 = vector.load %arg0[%c0, %c0_0] : memref<512x9xbf16, #tpu.memory_space<vmem>>, vector<512x9xbf16>
    %c0_1 = arith.constant 0 : index
    %c0_2 = arith.constant 0 : index
    %1 = vector.load %arg1[%c0_1, %c0_2] : memref<9x32xbf16, #tpu.memory_space<vmem>>, vector<9x32xbf16>
    %cst = arith.constant dense<0.000000e+00> : vector<512x32xf32>
    %2 = tpu.matmul %0, %1, %cst {dimension_numbers = #tpu.dot_dimension_numbers<[1], [0], [0], [1], [0, 0, 1, 1], [], []>} : vector<512x9xbf16>, vector<9x32xbf16>, vector<512x32xf32> -> vector<512x32xf32>
    %c0_3 = arith.constant 0 : index
    %c0_4 = arith.constant 0 : index
    %3 = vector.load %arg2[%c0_3, %c0_4] : memref<1x32xf32, #tpu.memory_space<vmem>>, vector<1x32xf32>
    %4 = vector.broadcast %3 : vector<1x32xf32> to vector<512x32xf32>
    %5 = arith.addf %2, %4 : vector<512x32xf32>
    %cst_5 = arith.constant 0.000000e+00 : f32
    %6 = vector.broadcast %cst_5 : f32 to vector<512x32xf32>
    %7 = arith.maximumf %5, %6 : vector<512x32xf32>
    %8 = vector.extract_strided_slice %7 {offsets = [0, 0], sizes = [256, 32], strides = [1, 1]} : vector<512x32xf32> to vector<256x32xf32>
    %cst_6 = arith.constant dense<0.000000e+00> : vector<32xf32>
    %9 = vector.multi_reduction <add>, %8, %cst_6 [0] : vector<256x32xf32> to vector<32xf32>
    %10 = vector.shape_cast %9 : vector<32xf32> to vector<1x32xf32>
    %cst_7 = arith.constant 3.906250e-03 : f32
    %11 = vector.broadcast %cst_7 : f32 to vector<1x32xf32>
    %12 = arith.mulf %10, %11 : vector<1x32xf32>
    %13 = vector.extract_strided_slice %7 {offsets = [256, 0], sizes = [256, 32], strides = [1, 1]} : vector<512x32xf32> to vector<256x32xf32>
    %cst_8 = arith.constant dense<0.000000e+00> : vector<32xf32>
    %14 = vector.multi_reduction <add>, %13, %cst_8 [0] : vector<256x32xf32> to vector<32xf32>
    %15 = vector.shape_cast %14 : vector<32xf32> to vector<1x32xf32>
    %cst_9 = arith.constant 3.906250e-03 : f32
    %16 = vector.broadcast %cst_9 : f32 to vector<1x32xf32>
    %17 = arith.mulf %15, %16 : vector<1x32xf32>
    %18 = tpu.concatenate %12, %17 in 0 : vector<1x32xf32>, vector<1x32xf32> -> vector<2x32xf32>
    %19 = arith.truncf %18 : vector<2x32xf32> to vector<2x32xbf16>
    %c0_10 = arith.constant 0 : index
    %c0_11 = arith.constant 0 : index
    %20 = vector.load %arg3[%c0_10, %c0_11] : memref<32x64xbf16, #tpu.memory_space<vmem>>, vector<32x64xbf16>
    %cst_12 = arith.constant dense<0.000000e+00> : vector<2x64xf32>
    %21 = tpu.matmul %19, %20, %cst_12 {dimension_numbers = #tpu.dot_dimension_numbers<[1], [0], [0], [1], [0, 0, 1, 1], [], []>} : vector<2x32xbf16>, vector<32x64xbf16>, vector<2x64xf32> -> vector<2x64xf32>
    %c0_13 = arith.constant 0 : index
    %c0_14 = arith.constant 0 : index
    %22 = vector.load %arg4[%c0_13, %c0_14] : memref<1x64xf32, #tpu.memory_space<vmem>>, vector<1x64xf32>
    %23 = vector.broadcast %22 : vector<1x64xf32> to vector<2x64xf32>
    %24 = arith.addf %21, %23 : vector<2x64xf32>
    %cst_15 = arith.constant 0.000000e+00 : f32
    %25 = vector.broadcast %cst_15 : f32 to vector<2x64xf32>
    %26 = arith.maximumf %24, %25 : vector<2x64xf32>
    %27 = arith.truncf %26 : vector<2x64xf32> to vector<2x64xbf16>
    %c0_16 = arith.constant 0 : index
    %c0_17 = arith.constant 0 : index
    %28 = vector.load %arg5[%c0_16, %c0_17] : memref<64x128xbf16, #tpu.memory_space<vmem>>, vector<64x128xbf16>
    %cst_18 = arith.constant dense<0.000000e+00> : vector<2x128xf32>
    %29 = tpu.matmul %27, %28, %cst_18 {dimension_numbers = #tpu.dot_dimension_numbers<[1], [0], [0], [1], [0, 0, 1, 1], [], []>} : vector<2x64xbf16>, vector<64x128xbf16>, vector<2x128xf32> -> vector<2x128xf32>
    %c0_19 = arith.constant 0 : index
    %c0_20 = arith.constant 0 : index
    %30 = vector.load %arg6[%c0_19, %c0_20] : memref<1x128xf32, #tpu.memory_space<vmem>>, vector<1x128xf32>
    %31 = vector.broadcast %30 : vector<1x128xf32> to vector<2x128xf32>
    %32 = arith.addf %29, %31 : vector<2x128xf32>
    %c0_21 = arith.constant 0 : index
    %c0_22 = arith.constant 0 : index
    %33 = vector.load %arg7[%c0_21, %c0_22] : memref<2x128xf32, #tpu.memory_space<vmem>>, vector<2x128xf32>
    tpu.vector_store %arg7[%c0_21, %c0_22], %32 {strides = array<i32>} : memref<2x128xf32, #tpu.memory_space<vmem>>, vector<2x128xf32>,
    return
  }
}

</mosaic_0001>

<bundles_post_ra>
// kernel: simple_model_forward.1
= control target key start
LH: loop header
LB: loop body
LE: loop exit
PB: predicated region body
PF: predicated region fallthrough
CT: control target
= control target key end

     0   :  { %vm360_vm0 = vcmask 1043456   ;;  %vm361_vm1 = vcmask 1044480   ;;  %v1115_v3 = vmov 65535   ;;  %s1560_s0 = inlined_call_operand.vmem [shape: bf16[512,9], index: 0, kind: input, shape index: {}]   ;;  %s1561_s1 = inlined_call_operand.vmem [shape: bf16[9,32], index: 1, kind: input, shape index: {}]   ;;  %s1562_s2 = inlined_call_operand.vmem [shape: f32[1,32], index: 2, kind: input, shape index: {}]   ;;  %s1563_s3 = inlined_call_operand.vmem [shape: bf16[32,64], index: 3, kind: input, shape index: {}]   ;;  %s1564_s4 = inlined_call_operand.vmem [shape: f32[1,64], index: 4, kind: input, shape index: {}]   ;;  %s1565_s5 = inlined_call_operand.vmem [shape: bf16[64,128], index: 5, kind: input, shape index: {}]   ;;  %s1566_s6 = inlined_call_operand.vmem [shape: f32[1,128], index: 6, kind: input, shape index: {}]   ;;  %s1567_s7 = inlined_call_operand.hbm [shape: f32[2,128], index: 7, kind: output, shape index: {}]  }
   0x1   :  { %v982_v0 = vld [vmem:[%s1561_s1] sm:$0xf]  ;;  %v1074_v1 = vld [vmem:[%s1561_s1] sm:$0x10]  ;;  %v362_v4 = vsel %vm360_vm0, 4294967295, %v1115_v3 }
   0x2   :  { %v983_v2 = vor.u32 %v1074_v1, %v982_v0  ;;  %v363_v5 = vsel %vm361_vm1, %v362_v4, 0 }
   0x4   :  { %v365_v6 = vand.u32 %v983_v2, %v363_v5 }
   0x5   :  { %12 = vsyncpa [#allocation3], 0  ;;  %v1042_v7 = vld [vmem:[%s1560_s0] sm:$0xff]  ;;  %v1051_v8 = vld [vmem:[%s1560_s0 + $0x48] sm:$0xff]  ;;  %vm263_vm2 = vcmask 72704   ;;  %vm600_vm3 = vcmask 261120  }
   0x6   :  { %374 = vmatpush.bf16.msra.mxu0 %v365_v6  ;;  %1081 = vmatpush.bf16.msra.mxu1 %v365_v6  ;;  %v1065_v9 = vld [vmem:[%s1560_s0 + $0xb8] sm:$0xff]  ;;  %v1059_v10 = vld [vmem:[%s1560_s0 + $0x88] sm:$0xff]  ;;  %v1052_v12 = vld [vmem:[%s1560_s0 + $0x50] sm:$0xff]  ;;  %vm741_vm4 = vcmask 1040384   ;;  %vm818_vm5 = vcmask 523264   ;;  %s1116_s10 = smov [#allocation2]  }
   0x7   :  { %1083 = vmatpush.bf16.msra.mxu3 %v365_v6  ;;  %1082 = vmatpush.bf16.msra.mxu2 %v365_v6  ;;  %v1043_v11 = vld [vmem:[%s1560_s0 + $0x8] sm:$0xff]  ;;  %v1066_v13 = vld [vmem:[%s1560_s0 + $0xc0] sm:$0xff]  ;;  %v1060_v14 = vld [vmem:[%s1560_s0 + $0x90] sm:$0xff]  ;;  %s841_s11 = sshll.u32 %s1116_s10, 4  ;;  %s843_s14 = sshll.u32 %s1567_s7, 4  ;;  %s842_s11 = int_to_ptr.vmem [resolvable:$true] %s841_s11  ;;  %s844_s14 = int_to_ptr.hbm [resolvable:$true] %s843_s14 }
   0x8   :  { %v1044_v15 = vld [vmem:[%s1560_s0 + $0x10] sm:$0xff]  ;;  %v1053_v16 = vld [vmem:[%s1560_s0 + $0x58] sm:$0xff]  ;;  %v1067_v17 = vld [vmem:[%s1560_s0 + $0xc8] sm:$0xff] }
   0x9   :  { %984 = vmatmul.msk.bf16.vlgmr.msra.gmra.mxu0 %vm263_vm2, %v1042_v7  ;;  %993 = vmatmul.msk.bf16.vlgmr.msra.gmra.mxu1 %vm263_vm2, %v1051_v8  ;;  %v1061_v18 = vld [vmem:[%s1560_s0 + $0x98] sm:$0xff]  ;;  %v1054_v20 = vld [vmem:[%s1560_s0 + $0x60] sm:$0xff]  ;;  %v1068_v21 = vld [vmem:[%s1560_s0 + $0xd0] sm:$0xff] }
   0xa   :  { %1007 = vmatmul.msk.bf16.vlgmr.msra.gmra.mxu3 %vm263_vm2, %v1065_v9  ;;  %1001 = vmatmul.msk.bf16.vlgmr.msra.gmra.mxu2 %vm263_vm2, %v1059_v10  ;;  %v1045_v19 = vld [vmem:[%s1560_s0 + $0x18] sm:$0xff]  ;;  %v1062_v22 = vld [vmem:[%s1560_s0 + $0xa0] sm:$0xff]  ;;  %v1055_v24 = vld [vmem:[%s1560_s0 + $0x68] sm:$0xff] }
   0xb   :  { %v1046_v23 = vld [vmem:[%s1560_s0 + $0x20] sm:$0xff]  ;;  %v1069_v25 = vld [vmem:[%s1560_s0 + $0xd8] sm:$0xff]  ;;  %v1063_v26 = vld [vmem:[%s1560_s0 + $0xa8] sm:$0xff] }
   0xc   :  { %v1047_v27 = vld [vmem:[%s1560_s0 + $0x28] sm:$0xff]  ;;  %v1056_v28 = vld [vmem:[%s1560_s0 + $0x70] sm:$0xff]  ;;  %v1070_v29 = vld [vmem:[%s1560_s0 + $0xe0] sm:$0xff] }
   0xd   :  { %v1064_v30 = vld [vmem:[%s1560_s0 + $0xb0] sm:$0xff]  ;;  %v1057_v32 = vld [vmem:[%s1560_s0 + $0x78] sm:$0xff]  ;;  %v1071_v33 = vld [vmem:[%s1560_s0 + $0xe8] sm:$0xff] }
   0xe   :  { %v1048_v31 = vld [vmem:[%s1560_s0 + $0x30] sm:$0xff]  ;;  %v1049_v34 = vld [vmem:[%s1560_s0 + $0x38] sm:$0xff]  ;;  %v1058_v35 = vld [vmem:[%s1560_s0 + $0x80] sm:$0xff] }
   0xf   :  { %v1072_v36 = vld [vmem:[%s1560_s0 + $0xf0] sm:$0xff]  ;;  %v1050_v37 = vld [vmem:[%s1560_s0 + $0x40] sm:$0xff]  ;;  %v1073_v40 = vld [vmem:[%s1560_s0 + $0xf8] sm:$0xff] }
  0x10   :  { %v1294_v41 = vld [vmem:[%s1562_s2] ss:$0 sm:$0xff] }
  0x19   :  { %985 = vmatmul.msk.bf16.gmra.mxu0 %vm263_vm2, %v1043_v11  ;;  %994 = vmatmul.msk.bf16.gmra.mxu1 %vm263_vm2, %v1052_v12 }
  0x1a   :  { %1008 = vmatmul.msk.bf16.gmra.mxu3 %vm263_vm2, %v1066_v13  ;;  %1002 = vmatmul.msk.bf16.gmra.mxu2 %vm263_vm2, %v1060_v14 }
  0x29   :  { %986 = vmatmul.msk.bf16.gmra.mxu0 %vm263_vm2, %v1044_v15  ;;  %995 = vmatmul.msk.bf16.gmra.mxu1 %vm263_vm2, %v1053_v16 }
  0x2a   :  { %1009 = vmatmul.msk.bf16.gmra.mxu3 %vm263_vm2, %v1067_v17  ;;  %1003 = vmatmul.msk.bf16.gmra.mxu2 %vm263_vm2, %v1061_v18  ;;  %v1076_v18 = vld [vmem:[%s1563_s3 + $0x8] sm:$0xff] }
  0x2b   :  { %773 = vmatpush.bf16.msrb.mxu1 %v1076_v18 }
  0x39   :  { %987 = vmatmul.msk.bf16.gmra.mxu0 %vm263_vm2, %v1045_v19  ;;  %996 = vmatmul.msk.bf16.gmra.mxu1 %vm263_vm2, %v1054_v20 }
  0x3a   :  { %1010 = vmatmul.msk.bf16.gmra.mxu3 %vm263_vm2, %v1068_v21  ;;  %1004 = vmatmul.msk.bf16.gmra.mxu2 %vm263_vm2, %v1062_v22 }
  0x49   :  { %988 = vmatmul.msk.bf16.gmra.mxu0 %vm263_vm2, %v1046_v23  ;;  %997 = vmatmul.msk.bf16.gmra.mxu1 %vm263_vm2, %v1055_v24 }
  0x4a   :  { %1011 = vmatmul.msk.bf16.gmra.mxu3 %vm263_vm2, %v1069_v25  ;;  %1005 = vmatmul.msk.bf16.gmra.mxu2 %vm263_vm2, %v1063_v26 }
  0x59   :  { %989 = vmatmul.msk.bf16.gmra.mxu0 %vm263_vm2, %v1047_v27  ;;  %998 = vmatmul.msk.bf16.gmra.mxu1 %vm263_vm2, %v1056_v28 }
  0x5a   :  { %1012 = vmatmul.msk.bf16.gmra.mxu3 %vm263_vm2, %v1070_v29  ;;  %1006 = vmatmul.msk.bf16.gmra.mxu2 %vm263_vm2, %v1064_v30 }
  0x69   :  { %990 = vmatmul.msk.bf16.gmra.mxu0 %vm263_vm2, %v1048_v31  ;;  %999 = vmatmul.msk.bf16.gmra.mxu1 %vm263_vm2, %v1057_v32 }
  0x6a   :  { %1013 = vmatmul.msk.bf16.gmra.mxu3 %vm263_vm2, %v1071_v33 }
  0x79   :  { %991 = vmatmul.msk.bf16.gmra.mxu0 %vm263_vm2, %v1049_v34  ;;  %1000 = vmatmul.msk.bf16.gmra.mxu1 %vm263_vm2, %v1058_v35 }
  0x7a   :  { %1014 = vmatmul.msk.bf16.gmra.mxu3 %vm263_vm2, %v1072_v36 }
  0x86   :  { %v376_v38 = vpop.f32.mrf.mxu0  ;;  %v1286_v39 = vpop.f32.mrf.mxu1 }
  0x87   :  { %v377_v42 = vadd.f32 %v1294_v41, %v376_v38 }
  0x89   :  { %992 = vmatmul.msk.bf16.gmra.mxu0 %vm263_vm2, %v1050_v37  ;;  %v536_v43 = vmax.f32 %v377_v42, 0.0 }
  0x8a   :  { %1015 = vmatmul.msk.bf16.gmra.mxu3 %vm263_vm2, %v1073_v40 }
  0x8b   :  { %v601_v48 = vsel %vm600_vm3, %v536_v43, 0.0 }
  0x8d   :  { %v1299_v44 = vpop.f32.mrf.mxu3  ;;  %v1317_v0 = vpop.f32.mrf.mxu2 }
  0x8e   :  { %v378_v45 = vpop.f32.mrf.mxu0  ;;  %v1301_v46 = vpop.f32.mrf.mxu1 }
  0x8f   :  { %v379_v47 = vadd.f32 %v1294_v41, %v378_v45 }
  0x91   :  { %v537_v49 = vmax.f32 %v379_v47, 0.0 }
  0x93   :  { %v602_v50 = vsel %vm600_vm3, %v537_v49, 0.0 }
  0x94   :  { %v603_v51 = vadd.f32 %v602_v50, %v601_v48 }
  0x95   :  { %v1306_v52 = vpop.f32.mrf.mxu3  ;;  %v463_v9 = vpop.f32.mrf.mxu2 }
  0x96   :  { %v381_v53 = vpop.f32.mrf.mxu0  ;;  %v1308_v54 = vpop.f32.mrf.mxu1 }
  0x97   :  { %v382_v55 = vadd.f32 %v1294_v41, %v381_v53 }
  0x99   :  { %v538_v56 = vmax.f32 %v382_v55, 0.0 }
  0x9b   :  { %v604_v57 = vsel %vm600_vm3, %v538_v56, 0.0 }
  0x9c   :  { %v605_v58 = vadd.f32 %v604_v57, %v603_v51 }
  0x9d   :  { %v1312_v59 = vpop.f32.mrf.mxu3  ;;  %v466_v19 = vpop.f32.mrf.mxu2 }
  0x9e   :  { %v383_v60 = vpop.f32.mrf.mxu0  ;;  %v1314_v61 = vpop.f32.mrf.mxu1 }
  0x9f   :  { %v384_v62 = vadd.f32 %v1294_v41, %v383_v60 }
  0xa1   :  { %v539_v63 = vmax.f32 %v384_v62, 0.0 }
  0xa3   :  { %v606_v1 = vsel %vm600_vm3, %v539_v63, 0.0 }
  0xa4   :  { %v607_v2 = vadd.f32 %v606_v1, %v605_v58 }
  0xa5   :  { %v1323_v6 = vpop.f32.mrf.mxu3  ;;  %v468_v29 = vpop.f32.mrf.mxu2 }
  0xa6   :  { %v386_v3 = vpop.f32.mrf.mxu0  ;;  %v1320_v4 = vpop.f32.mrf.mxu1 }
  0xa7   :  { %v387_v5 = vadd.f32 %v1294_v41, %v386_v3 }
  0xa9   :  { %v540_v7 = vmax.f32 %v387_v5, 0.0 }
  0xab   :  { %v608_v8 = vsel %vm600_vm3, %v540_v7, 0.0 }
  0xac   :  { %v609_v10 = vadd.f32 %v608_v8, %v607_v2 }
  0xad   :  { %v1329_v15 = vpop.f32.mrf.mxu3  ;;  %v471_v33 = vpop.f32.mrf.mxu2 }
  0xae   :  { %v388_v11 = vpop.f32.mrf.mxu0  ;;  %v1326_v12 = vpop.f32.mrf.mxu1 }
  0xaf   :  { %v389_v13 = vadd.f32 %v1294_v41, %v388_v11 }
  0xb1   :  { %v541_v14 = vmax.f32 %v389_v13, 0.0 }
  0xb3   :  { %v610_v16 = vsel %vm600_vm3, %v541_v14, 0.0 }
  0xb4   :  { %v611_v17 = vadd.f32 %v610_v16, %v609_v10  ;;  %v462_v10 = vadd.f32 %v1294_v41, %v1317_v0 }
  0xb5   :  { %v1339_v25 = vpop.f32.mrf.mxu3  ;;  %v1351_v37 = vpop.f32.mrf.mxu2 }
  0xb6   :  { %v391_v20 = vpop.f32.mrf.mxu0  ;;  %v1335_v21 = vpop.f32.mrf.mxu1  ;;  %v570_v0 = vmax.f32 %v462_v10, 0.0 }
  0xb7   :  { %v392_v22 = vadd.f32 %v1294_v41, %v391_v20 }
  0xb8   :  { %v674_v10 = vsel %vm600_vm3, %v570_v0, 0.0 }
  0xb9   :  { %v542_v23 = vmax.f32 %v392_v22, 0.0 }
  0xbb   :  { %v612_v24 = vsel %vm600_vm3, %v542_v23, 0.0 }
  0xbc   :  { %v613_v26 = vadd.f32 %v612_v24, %v611_v17  ;;  %v464_v17 = vadd.f32 %v1294_v41, %v463_v9 }
  0xbd   :  { %v1343_v30 = vpop.f32.mrf.mxu3  ;;  %v1357_v43 = vpop.f32.mrf.mxu2 }
  0xbe   :  { %v393_v27 = vpop.f32.mrf.mxu0  ;;  %v1341_v28 = vpop.f32.mrf.mxu1 }
  0xbf   :  { %v394_v58 = vadd.f32 %v1294_v41, %v393_v27 }
  0xc1   :  { %v543_v2 = vmax.f32 %v394_v58, 0.0 }
  0xc3   :  { %v614_v13 = vsel %vm600_vm3, %v543_v2, 0.0 }
  0xc5   :  { %v1349_v36 = vpop.f32.mrf.mxu3  ;;  %v1365_v51 = vpop.f32.mrf.mxu2 }
  0xc6   :  { %v396_v31 = vpop.f32.mrf.mxu0  ;;  %v1345_v32 = vpop.f32.mrf.mxu1 }
  0xc7   :  { %v397_v63 = vadd.f32 %v1294_v41, %v396_v31 }
  0xc9   :  { %v544_v7 = vmax.f32 %v397_v63, 0.0  ;;  %v571_v63 = vmax.f32 %v464_v17, 0.0 }
  0xcb   :  { %v616_v23 = vsel %vm600_vm3, %v544_v7, 0.0 }
  0xcd   :  { %v1355_v42 = vpop.f32.mrf.mxu3  ;;  %v1371_v57 = vpop.f32.mrf.mxu2 }
  0xce   :  { %v398_v34 = vpop.f32.mrf.mxu0  ;;  %v1347_v35 = vpop.f32.mrf.mxu1 }
  0xcf   :  { %v399_v3 = vadd.f32 %v1294_v41, %v398_v34  ;;  %v615_v34 = vadd.f32 %v614_v13, %v613_v26 }
  0xd1   :  { %v545_v14 = vmax.f32 %v399_v3, 0.0  ;;  %v617_v2 = vadd.f32 %v616_v23, %v615_v34  ;;  %v469_v3 = vadd.f32 %v1294_v41, %v468_v29 }
  0xd3   :  { %v618_v58 = vsel %vm600_vm3, %v545_v14, 0.0  ;;  %v573_v0 = vmax.f32 %v469_v3, 0.0 }
  0xd5   :  { %v1361_v48 = vpop.f32.mrf.mxu3  ;;  %v1382_v11 = vpop.f32.mrf.mxu2  ;;  %v680_v3 = vsel %vm600_vm3, %v573_v0, 0.0 }
  0xd6   :  { %v401_v38 = vpop.f32.mrf.mxu0  ;;  %v1353_v40 = vpop.f32.mrf.mxu1 }
  0xd7   :  { %v402_v5 = vadd.f32 %v1294_v41, %v401_v38  ;;  %v467_v38 = vadd.f32 %v1294_v41, %v466_v19 }
  0xd9   :  { %v546_v18 = vmax.f32 %v402_v5, 0.0  ;;  %v572_v13 = vmax.f32 %v467_v38, 0.0 }
  0xdb   :  { %v620_v5 = vsel %vm600_vm3, %v546_v18, 0.0 }
  0xdd   :  { %v1367_v53 = vpop.f32.mrf.mxu3 }
  0xde   :  { %v403_v45 = vpop.f32.mrf.mxu0  ;;  %v1359_v47 = vpop.f32.mrf.mxu1 }
  0xdf   :  { %v404_v16 = vadd.f32 %v1294_v41, %v403_v45 }
  0xe5   :  { %v1375_v1 = vpop.f32.mrf.mxu3 }
  0xe6   :  { %v406_v49 = vpop.f32.mrf.mxu0  ;;  %v1363_v50 = vpop.f32.mrf.mxu1 }
  0xe7   :  { %v407_v24 = vadd.f32 %v1294_v41, %v406_v49 }
  0xe9   :  { %v548_v7 = vmax.f32 %v407_v24, 0.0 }
  0xeb   :  { %v624_v34 = vsel %vm600_vm3, %v548_v7, 0.0  ;;  %v479_v7 = vadd.f32 %v1294_v41, %v1365_v51  ;;  %v424_v51 = vadd.f32 %v1294_v41, %v1301_v46 }
  0xed   :  { %v1395_v49 = vpop.f32.mrf.mxu3 }
  0xee   :  { %v408_v55 = vpop.f32.mrf.mxu0  ;;  %v1369_v56 = vpop.f32.mrf.mxu1 }
  0xef   :  { %v409_v45 = vadd.f32 %v1294_v41, %v408_v55  ;;  %v619_v55 = vadd.f32 %v618_v58, %v617_v2  ;;  %v678_v58 = vsel %vm600_vm3, %v572_v13, 0.0 }
  0xf1   :  { %v549_v17 = vmax.f32 %v409_v45, 0.0  ;;  %v621_v23 = vadd.f32 %v620_v5, %v619_v55 }
  0xf6   :  { %v411_v60 = vpop.f32.mrf.mxu0  ;;  %v456_v62 = vpop.f32.mrf.mxu1 }
  0xf7   :  { %v457_v8 = vadd.f32 %v1294_v41, %v456_v62  ;;  %v547_v62 = vmax.f32 %v404_v16, 0.0  ;;  %v472_v16 = vadd.f32 %v1294_v41, %v471_v33 }
  0xf9   :  { %v568_v27 = vmax.f32 %v457_v8, 0.0  ;;  %v412_v8 = vadd.f32 %v1294_v41, %v411_v60  ;;  %v622_v29 = vsel %vm600_vm3, %v547_v62, 0.0  ;;  %v474_v60 = vadd.f32 %v1294_v41, %v1351_v37 }
  0xfa   :  { %v623_v62 = vadd.f32 %v622_v29, %v621_v23  ;;  %v482_v29 = vadd.f32 %v1294_v41, %v1371_v57  ;;  %v427_v57 = vadd.f32 %v1294_v41, %v1308_v54 }
  0xfb   :  { %v671_v26 = vsel %vm600_vm3, %v568_v27, 0.0  ;;  %v550_v38 = vmax.f32 %v412_v8, 0.0  ;;  %v575_v2 = vmax.f32 %v474_v60, 0.0  ;;  %v577_v60 = vmax.f32 %v479_v7, 0.0 }
  0xfc   :  { %v625_v5 = vadd.f32 %v624_v34, %v623_v62  ;;  %v578_v62 = vmax.f32 %v482_v29, 0.0  ;;  %v492_v7 = vadd.f32 %v1294_v41, %v1299_v44 }
  0xfd   :  { %v628_v8 = vsel %vm600_vm3, %v550_v38, 0.0 }
  0xfe   :  { %v413_v20 = vpop.f32.mrf.mxu0  ;;  %v458_v22 = vpop.f32.mrf.mxu1 }
  0xff   :  { %v459_v31 = vadd.f32 %v1294_v41, %v458_v22  ;;  %v414_v18 = vadd.f32 %v1294_v41, %v413_v20  ;;  %v676_v22 = vsel %vm600_vm3, %v571_v63, 0.0  ;;  %v574_v20 = vmax.f32 %v472_v16, 0.0 }
 0x100   :  { %v626_v63 = vsel %vm600_vm3, %v549_v17, 0.0 }
 0x101   :  { %v569_v9 = vmax.f32 %v459_v31, 0.0  ;;  %v486_v31 = vpop.f32.mrf.mxu2  ;;  %v551_v37 = vmax.f32 %v414_v18, 0.0  ;;  %v627_v13 = vadd.f32 %v626_v63, %v625_v5  ;;  %v684_v18 = vsel %vm600_vm3, %v575_v2, 0.0 }
 0x102   :  { %v688_v2 = vsel %vm600_vm3, %v577_v60, 0.0 }
 0x103   :  { %v672_v19 = vsel %vm600_vm3, %v569_v9, 0.0  ;;  %v477_v9 = vadd.f32 %v1294_v41, %v1357_v43  ;;  %v1419_v43 = vpop.f32.mrf.mxu3  ;;  %v630_v17 = vsel %vm600_vm3, %v551_v37, 0.0 }
 0x104   :  { %v673_v14 = vadd.f32 %v672_v19, %v671_v26 }
 0x105   :  { %v576_v16 = vmax.f32 %v477_v9, 0.0  ;;  %v555_v9 = vmax.f32 %v424_v51, 0.0  ;;  %v434_v51 = vadd.f32 %v1294_v41, %v1326_v12 }
 0x106   :  { %v675_v24 = vadd.f32 %v674_v10, %v673_v14  ;;  %v416_v27 = vpop.f32.mrf.mxu0  ;;  %v422_v10 = vadd.f32 %v1294_v41, %v1286_v39  ;;  %v682_v14 = vsel %vm600_vm3, %v574_v20, 0.0 }
 0x107   :  { %v417_v33 = vadd.f32 %v1294_v41, %v416_v27  ;;  %v638_v44 = vsel %vm600_vm3, %v555_v9, 0.0 }
 0x108   :  { %v677_v45 = vadd.f32 %v676_v22, %v675_v24  ;;  %v629_v22 = vadd.f32 %v628_v8, %v627_v13  ;;  %v484_v24 = vadd.f32 %v1294_v41, %v1382_v11  ;;  %v554_v34 = vmax.f32 %v422_v10, 0.0 }
 0x109   :  { %v552_v19 = vmax.f32 %v417_v33, 0.0  ;;  %v488_v46 = vpop.f32.mrf.mxu2  ;;  %v429_v11 = vadd.f32 %v1294_v41, %v1314_v61  ;;  %v432_v61 = vadd.f32 %v1294_v41, %v1320_v4  ;;  %v690_v10 = vsel %vm600_vm3, %v578_v62, 0.0 }
 0x10a   :  { %v679_v26 = vadd.f32 %v678_v58, %v677_v45  ;;  %v631_v38 = vadd.f32 %v630_v17, %v629_v22  ;;  %v686_v58 = vsel %vm600_vm3, %v576_v16, 0.0  ;;  %v487_v45 = vadd.f32 %v1294_v41, %v486_v31 }
 0x10b   :  { %v632_v27 = vsel %vm600_vm3, %v552_v19, 0.0  ;;  %v579_v5 = vmax.f32 %v484_v24, 0.0  ;;  %v636_v19 = vsel %vm600_vm3, %v554_v34, 0.0  ;;  %v1449_v17 = vpop.f32.mrf.mxu3  ;;  %v558_v24 = vmax.f32 %v432_v61, 0.0 }
 0x10c   :  { %v681_v55 = vadd.f32 %v680_v3, %v679_v26  ;;  %v633_v37 = vadd.f32 %v632_v27, %v631_v38  ;;  %v489_v26 = vadd.f32 %v1294_v41, %v488_v46  ;;  %v556_v3 = vmax.f32 %v427_v57, 0.0 }
 0x10d   :  { %v580_v13 = vmax.f32 %v487_v45, 0.0  ;;  %v437_v27 = vadd.f32 %v1294_v41, %v1335_v21  ;;  %v559_v46 = vmax.f32 %v434_v51, 0.0  ;;  %v499_v62 = vadd.f32 %v1294_v41, %v1323_v6 }
 0x10e   :  { %v683_v23 = vadd.f32 %v682_v14, %v681_v55  ;;  %v418_v39 = vpop.f32.mrf.mxu0  ;;  %v557_v55 = vmax.f32 %v429_v11, 0.0  ;;  %v494_v14 = vadd.f32 %v1294_v41, %v1306_v52  ;;  %v581_v22 = vmax.f32 %v489_v26, 0.0  ;;  %v1075_v52 = vld [vmem:[%s1563_s3] sm:$0xff] }
 0x10f   :  { %v419_v0 = vadd.f32 %v1294_v41, %v418_v39  ;;  %v640_v4 = vsel %vm600_vm3, %v556_v3, 0.0  ;;  %v694_v12 = vsel %vm600_vm3, %v580_v13, 0.0  ;;  %774 = vmatpush.bf16.msrb.mxu1 %v1075_v52  ;;  %v644_v11 = vsel %vm600_vm3, %v558_v24, 0.0 }
 0x110   :  { %v685_v33 = vadd.f32 %v684_v18, %v683_v23  ;;  %v692_v18 = vsel %vm600_vm3, %v579_v5, 0.0  ;;  %v582_v23 = vmax.f32 %v492_v7, 0.0  ;;  %v642_v34 = vsel %vm600_vm3, %v557_v55, 0.0 }
 0x111   :  { %v553_v20 = vmax.f32 %v419_v0, 0.0  ;;  %v497_v0 = vadd.f32 %v1294_v41, %v1312_v59  ;;  %v583_v57 = vmax.f32 %v494_v14, 0.0  ;;  %v696_v21 = vsel %vm600_vm3, %v581_v22, 0.0 }
 0x112   :  { %v687_v63 = vadd.f32 %v686_v58, %v685_v33  ;;  %v439_v58 = vadd.f32 %v1294_v41, %v1341_v28  ;;  %v698_v45 = vsel %vm600_vm3, %v582_v23, 0.0  ;;  %v502_v59 = vadd.f32 %v1294_v41, %v1329_v15 }
 0x113   :  { %v634_v54 = vsel %vm600_vm3, %v553_v20, 0.0  ;;  %v700_v28 = vsel %vm600_vm3, %v583_v57, 0.0  ;;  %v504_v6 = vadd.f32 %v1294_v41, %v1339_v25  ;;  %v646_v26 = vsel %vm600_vm3, %v559_v46, 0.0  ;;  %v1484_v61 = vpop.f32.mrf.mxu3 }
 0x114   :  { %v689_v8 = vadd.f32 %v688_v2, %v687_v63  ;;  %v635_v31 = vadd.f32 %v634_v54, %v633_v37  ;;  %v560_v63 = vmax.f32 %v437_v27, 0.0  ;;  %v584_v37 = vmax.f32 %v497_v0, 0.0 }
 0x115   :  { %v442_v2 = vadd.f32 %v1294_v41, %v1345_v32  ;;  %v561_v3 = vmax.f32 %v439_v58, 0.0  ;;  %v585_v15 = vmax.f32 %v499_v62, 0.0  ;;  %v444_v7 = vadd.f32 %v1294_v41, %v1347_v35 }
 0x116   :  { %v691_v16 = vadd.f32 %v690_v10, %v689_v8  ;;  %v637_v29 = vadd.f32 %v636_v19, %v635_v31  ;;  %v586_v8 = vmax.f32 %v502_v59, 0.0  ;;  %v507_v31 = vadd.f32 %v1294_v41, %v1343_v30 }
 0x117   :  { %v648_v10 = vsel %vm600_vm3, %v560_v63, 0.0  ;;  %v702_v25 = vsel %vm600_vm3, %v584_v37, 0.0  ;;  %v562_v13 = vmax.f32 %v442_v2, 0.0  ;;  %v447_v55 = vadd.f32 %v1294_v41, %v1353_v40 }
 0x118   :  { %v693_v39 = vadd.f32 %v692_v18, %v691_v16  ;;  %v639_v60 = vadd.f32 %v638_v44, %v637_v29  ;;  %v587_v14 = vmax.f32 %v504_v6, 0.0  ;;  %v509_v35 = vadd.f32 %v1294_v41, %v1349_v36 }
 0x119   :  { %v650_v30 = vsel %vm600_vm3, %v561_v3, 0.0  ;;  %v704_v44 = vsel %vm600_vm3, %v585_v15, 0.0  ;;  %v563_v51 = vmax.f32 %v444_v7, 0.0  ;;  %v449_v18 = vadd.f32 %v1294_v41, %v1359_v47 }
 0x11a   :  { %v695_v38 = vadd.f32 %v694_v12, %v693_v39  ;;  %v641_v33 = vadd.f32 %v640_v4, %v639_v60  ;;  %v706_v22 = vsel %vm600_vm3, %v586_v8, 0.0  ;;  %v588_v4 = vmax.f32 %v507_v31, 0.0 }
 0x11b   :  { %v652_v40 = vsel %vm600_vm3, %v562_v13, 0.0  ;;  %v564_v60 = vmax.f32 %v447_v55, 0.0  ;;  %v452_v36 = vadd.f32 %v1294_v41, %v1363_v50  ;;  %v512_v52 = vadd.f32 %v1294_v41, %v1355_v42 }
 0x11c   :  { %v643_v20 = vadd.f32 %v642_v34, %v641_v33  ;;  %v697_v9 = vadd.f32 %v696_v21, %v695_v38  ;;  %v708_v24 = vsel %vm600_vm3, %v587_v14, 0.0  ;;  %v589_v27 = vmax.f32 %v509_v35, 0.0  ;;  %v1080_v14 = vld [vmem:[%s1565_s5 + $0x18] sm:$0xff] }
 0x11d   :  { %v654_v47 = vsel %vm600_vm3, %v563_v51, 0.0  ;;  %v565_v34 = vmax.f32 %v449_v18, 0.0  ;;  %v454_v57 = vadd.f32 %v1294_v41, %v1369_v56  ;;  %v514_v38 = vadd.f32 %v1294_v41, %v1361_v48  ;;  %826 = vmatpush.bf16.msrb.mxu2 %v1080_v14 }
 0x11e   :  { %v645_v5 = vadd.f32 %v644_v11, %v643_v20  ;;  %v699_v54 = vadd.f32 %v698_v45, %v697_v9  ;;  %v710_v33 = vsel %vm600_vm3, %v588_v4, 0.0  ;;  %v656_v42 = vsel %vm600_vm3, %v564_v60, 0.0  ;;  %v531_v20 = vpop.f32.mrf.mxu3 }
 0x11f   :  { %v566_v58 = vmax.f32 %v452_v36, 0.0  ;;  %v590_v62 = vmax.f32 %v512_v52, 0.0  ;;  %v517_v21 = vadd.f32 %v1294_v41, %v1367_v53  ;;  %v712_v45 = vsel %vm600_vm3, %v589_v27, 0.0 }
 0x120   :  { %v647_v19 = vadd.f32 %v646_v26, %v645_v5  ;;  %v701_v32 = vadd.f32 %v700_v28, %v699_v54  ;;  %v658_v56 = vsel %vm600_vm3, %v565_v34, 0.0  ;;  %v567_v11 = vmax.f32 %v454_v57, 0.0 }
 0x121   :  { %v591_v48 = vmax.f32 %v514_v38, 0.0  ;;  %v519_v63 = vadd.f32 %v1294_v41, %v1375_v1  ;;  %v660_v28 = vsel %vm600_vm3, %v566_v58, 0.0  ;;  %v714_v6 = vsel %vm600_vm3, %v590_v62, 0.0 }
 0x122   :  { %v649_v16 = vadd.f32 %v648_v10, %v647_v19  ;;  %v703_v29 = vadd.f32 %v702_v25, %v701_v32  ;;  %v592_v5 = vmax.f32 %v517_v21, 0.0  ;;  %v522_v53 = vadd.f32 %v1294_v41, %v1395_v49 }
 0x123   :  { %v662_v3 = vsel %vm600_vm3, %v567_v11, 0.0  ;;  %v716_v15 = vsel %vm600_vm3, %v591_v48, 0.0  ;;  %v593_v7 = vmax.f32 %v519_v63, 0.0  ;;  %v524_v1 = vadd.f32 %v1294_v41, %v1419_v43  ;;  %v1087_v11 = vld [vmem:[%s1564_s4] ss:$0 sm:$0xff] }
 0x124   :  { %v651_v23 = vadd.f32 %v650_v30, %v649_v16  ;;  %v705_v39 = vadd.f32 %v704_v44, %v703_v29  ;;  %v718_v19 = vsel %vm600_vm3, %v592_v5, 0.0  ;;  %v594_v32 = vmax.f32 %v522_v53, 0.0 }
 0x125   :  { %v527_v10 = vadd.f32 %v1294_v41, %v1449_v17  ;;  %v720_v49 = vsel %vm600_vm3, %v593_v7, 0.0  ;;  %v595_v13 = vmax.f32 %v524_v1, 0.0  ;;  %v529_v55 = vadd.f32 %v1294_v41, %v1484_v61  ;;  %v1079_v17 = vld [vmem:[%s1565_s5 + $0x10] sm:$0xff] }
 0x126   :  { %v653_v0 = vadd.f32 %v652_v40, %v651_v23  ;;  %v707_v12 = vadd.f32 %v706_v22, %v705_v39  ;;  %v533_v35 = vpop.f32.mrf.mxu3  ;;  %v722_v16 = vsel %vm600_vm3, %v594_v32, 0.0  ;;  %v532_v30 = vadd.f32 %v1294_v41, %v531_v20  ;;  %827 = vmatpush.bf16.msrb.mxu2 %v1079_v17  ;;  %v1078_v40 = vld [vmem:[%s1565_s5 + $0x8] sm:$0xff] }
 0x127   :  { %v596_v29 = vmax.f32 %v527_v10, 0.0  ;;  %v724_v61 = vsel %vm600_vm3, %v595_v13, 0.0  ;;  %v597_v18 = vmax.f32 %v529_v55, 0.0  ;;  %v534_v22 = vadd.f32 %v1294_v41, %v533_v35  ;;  %v1077_v41 = vld [vmem:[%s1565_s5] sm:$0xff] }
 0x128   :  { %v655_v50 = vadd.f32 %v654_v47, %v653_v0  ;;  %v709_v46 = vadd.f32 %v708_v24, %v707_v12  ;;  %v598_v39 = vmax.f32 %v532_v30, 0.0 }
 0x129   :  { %v726_v23 = vsel %vm600_vm3, %v596_v29, 0.0  ;;  %v728_v52 = vsel %vm600_vm3, %v597_v18, 0.0  ;;  %v599_v24 = vmax.f32 %v534_v22, 0.0 }
 0x12a   :  { %v711_v59 = vadd.f32 %v710_v33, %v709_v46  ;;  %v657_v9 = vadd.f32 %v656_v42, %v655_v50  ;;  %v730_v0 = vsel %vm600_vm3, %v598_v39, 0.0  ;;  %828 = vmatpush.bf16.msrb.mxu2 %v1078_v40 }
 0x12b   :  { %v732_v34 = vsel %vm600_vm3, %v599_v24, 0.0 }
 0x12c   :  { %v713_v37 = vadd.f32 %v712_v45, %v711_v59  ;;  %v659_v2 = vadd.f32 %v658_v56, %v657_v9 }
 0x12e   :  { %v715_v54 = vadd.f32 %v714_v6, %v713_v37  ;;  %v661_v26 = vadd.f32 %v660_v28, %v659_v2  ;;  %829 = vmatpush.bf16.msrb.mxu2 %v1077_v41  ;;  %v1088_v6 = vld [vmem:[%s1566_s6] ss:$0 sm:$0xff] }
 0x130   :  { %v717_v8 = vadd.f32 %v716_v15, %v715_v54  ;;  %v663_v31 = vadd.f32 %v662_v3, %v661_v26 }
 0x132   :  { %v719_v25 = vadd.f32 %v718_v19, %v717_v8  ;;  %v664_v51 = vrot.slane %v663_v31, 4 }
 0x134   :  { %v721_v43 = vadd.f32 %v720_v49, %v719_v25  ;;  %v665_v36 = vadd.f32 %v664_v51, %v663_v31 }
 0x136   :  { %v723_v44 = vadd.f32 %v722_v16, %v721_v43  ;;  %v666_v47 = vrot.slane %v665_v36, 2 }
 0x138   :  { %v725_v4 = vadd.f32 %v724_v61, %v723_v44  ;;  %v667_v33 = vadd.f32 %v666_v47, %v665_v36 }
 0x13a   :  { %v727_v60 = vadd.f32 %v726_v23, %v725_v4  ;;  %v668_v42 = vrot.slane %v667_v33, 1 }
 0x13c   :  { %v729_v27 = vadd.f32 %v728_v52, %v727_v60  ;;  %v669_v21 = vadd.f32 %v668_v42, %v667_v33 }
 0x13e   :  { %v731_v12 = vadd.f32 %v730_v0, %v729_v27  ;;  %v670_v20 = vmul.f32 0.00390625, %v669_v21 }
 0x140   :  { %v733_v57 = vadd.f32 %v732_v34, %v731_v12 }
 0x142   :  { %v734_v38 = vrot.slane %v733_v57, 4 }
 0x144   :  { %v735_v50 = vadd.f32 %v734_v38, %v733_v57 }
 0x146   :  { %v736_v46 = vrot.slane %v735_v50, 2 }
 0x148   :  { %v737_v58 = vadd.f32 %v736_v46, %v735_v50 }
 0x14a   :  { %v738_v62 = vrot.slane %v737_v58, 1 }
 0x14c   :  { %v739_v45 = vadd.f32 %v738_v62, %v737_v58 }
 0x14e   :  { %v740_v59 = vmul.f32 0.00390625, %v739_v45 }
 0x150   :  { %v742_v9 = vsel %vm741_vm4, %v670_v20, %v740_v59 }
 0x151   :  { %v743_v56 = vpack.c.bf16 %v742_v9, %v742_v9 }
 0x153   :  { %1024 = vmatmul.msk.bf16.vlgmr.msrb.gmra.mxu1 %vm600_vm3, %v743_v56 }
 0x1d0   :  { %v776_v48 = vpop.f32.mrf.mxu1 }
 0x1d1   :  { %v777_v63 = vadd.f32 %v1087_v11, %v776_v48 }
 0x1d3   :  { %v780_v37 = vmax.f32 %v777_v63, 0.0 }
 0x1d5   :  { %v781_v2 = vpack.c.bf16 %v780_v37, %v780_v37 }
 0x1d7   :  { %1041 = vmatmul.msk.bf16.vlgmr.msrb.gmra.mxu2 %vm818_vm5, %v781_v2 }
 0x1d8   :  { %v778_v28 = vpop.f32.mrf.mxu1 }
 0x25a   :  { %v831_v5 = vpop.f32.mrf.mxu2 }
 0x25b   :  { %v832_v53 = vadd.f32 %v1088_v6, %v831_v5 }
 0x25d   :  { %835 = vst [vmem:[#allocation2] sm:$0x3] %v832_v53 }
 0x25e   :  { %846 = dma.vmem_to_hbm [thread:$0]  %s842_s11, 32, %s844_s14, [#allocation3]  }
 0x262   :  { %v833_v54 = vpop.f32.mrf.mxu2 }
 0x263   :  { %1113 = dma.done.wait [#allocation3], 32  }
 0x264   :  { %1114 = vsyncadd [#allocation3], 4294967264 }
 0x265   :  { %851 = vsyncpa [#allocation3], 1 }

</bundles_post_ra>
